<compile_context>
chip_gen: v5e
topology: v5e:2x2
jax: 0.10.0
libtpu: 0.0.40
codegen_flags: <defaults>
</compile_context>

<pallas_src>
import functools

import jax
import jax.numpy as jnp
from jax.experimental import pallas as pl
from jax.experimental.pallas import tpu as pltpu


def _round_up(x, m):
    return (x + m - 1) // m * m


def _tpu_vmem_capacity_bytes():
    """Per-TensorCore VMEM (128 MiB v5e/v6e, 64 MiB v7x); conservative fallback."""
    try:
        cap = getattr(pltpu.get_tpu_info(), "vmem_capacity_bytes", None)
        if cap:
            return int(cap)
    except Exception:
        pass
    return 64 * 1024 * 1024


def _binary_conv_kernel(p_ref, w_ref, s_ref, o_ref, *, nb):
    """p_ref: (NB, Kp, M)  bf16 im2col patches (M = Ho*Wo on the lane axis)
       w_ref: (CT, Kp)     bf16 sign(W) tile (exact +/-1, scale factored out)
       s_ref: (CT, 1)      f32 per-out-channel scale
       o_ref: (NB, CT, M)  f32 output block, already N-C-(HW) layout
    """
    w = w_ref[...]
    s = s_ref[...]
    # Static unrolled loop over the batch block: the sign-weight tile stays
    # resident and is reused for all NB images; each dot is a single
    # (CT, Kp) @ (Kp, M) MXU matmul with f32 accumulation, result lane-dense.
    for b in range(nb):
        acc = jnp.dot(w, p_ref[b], preferred_element_type=jnp.float32)  # (CT, M)
        o_ref[b] = (acc * s).astype(o_ref.dtype)


def binary_conv(x_nchw, weight_flat, shape, stride=1, padding=1):
    """x_nchw: (N, Cin, H, W); weight_flat: (Cout*Cin*K*K, 1) like the torch Parameter."""
    Cout, Cin, KH, KW = shape
    N, _, H, W = x_nchw.shape

    # ---- binarize weights once, outside the kernel (tiny; pure XLA) ---------
    w = weight_flat.reshape(shape).astype(jnp.float32)            # OIHW
    scale = jnp.mean(jnp.abs(w), axis=(1, 2, 3))                  # (Cout,)  (detached in torch)
    w_sign = jnp.sign(w)                                          # exact {-1, 0, +1}

    Kdim = KH * KW * Cin
    Kp = _round_up(Kdim, 8)                                       # sublane-aligned contraction
    Cp = _round_up(Cout, 8)                                       # sublane-aligned channels
    CT = min(Cp, 256)                                             # out-channel tile (sublane axis)
    Cp = _round_up(Cp, CT)
    n_ct = Cp // CT

    # im2col weight layout: row index = (kh*KW + kw)*Cin + cin.  Keep the bf16
    # operand a pure +/-1 matrix; the f32 scale is applied post-accumulation.
    w_mat = jnp.transpose(w_sign, (0, 2, 3, 1)).reshape(Cout, Kdim)
    w_mat = jnp.pad(w_mat, ((0, Cp - Cout), (0, Kp - Kdim))).astype(jnp.bfloat16)
    scale_col = jnp.pad(scale, (0, Cp - Cout)).reshape(Cp, 1).astype(jnp.float32)

    # ---- wrapper-side im2col of the activations (lane-dense patches) --------
    Hp, Wp = H + 2 * padding, W + 2 * padding
    Ho = (Hp - KH) // stride + 1
    Wo = (Wp - KW) // stride + 1
    M = Ho * Wo                                                   # lane axis of the kernel

    xp = jnp.pad(x_nchw.astype(jnp.float32),
                 ((0, 0), (0, 0), (padding, padding), (padding, padding)))
    taps = [xp[:, :, kh:kh + (Ho - 1) * stride + 1:stride,
                      kw:kw + (Wo - 1) * stride + 1:stride]
            for kh in range(KH) for kw in range(KW)]              # each (N, Cin, Ho, Wo)
    patches = jnp.stack(taps, axis=1)                             # (N, KH*KW, Cin, Ho, Wo)
    patches = patches.reshape(N, Kdim, M)                         # row order matches w_mat
    patches = jnp.pad(patches, ((0, 0), (0, Kp - Kdim), (0, 0))).astype(jnp.bfloat16)

    # ---- batch blocking sized to the per-TensorCore VMEM budget -------------
    cap = _tpu_vmem_capacity_bytes()
    budget = min(cap // 3, 40 * 1024 * 1024)                      # ~21 MiB on v7x, 40 MiB on v5e/v6e
    per_img = 2 * (Kp * M * 2 + CT * M * 4)                       # double-buffered in + out bytes
    nb = int(max(1, min(N, 8, budget // max(per_img, 1))))
    n_nb = pl.cdiv(N, nb)
    Np = n_nb * nb
    if Np != N:
        patches = jnp.pad(patches, ((0, Np - N), (0, 0), (0, 0)))

    per_step = nb * per_img + 2 * (CT * Kp * 2 + CT * 4)
    vmem_limit = int(max(32 * 1024 * 1024, min(per_step + (8 << 20), cap * 3 // 4)))

    kernel = functools.partial(_binary_conv_kernel, nb=nb)

    out = pl.pallas_call(
        kernel,
        out_shape=jax.ShapeDtypeStruct((Np, Cp, M), jnp.float32),
        # Weight-changing axis outermost: the (ct, 0) weight block index is
        # constant across consecutive batch steps -> no weight re-DMA.
        grid=(n_ct, n_nb),
        in_specs=[
            pl.BlockSpec((nb, Kp, M), lambda ct, b: (b, 0, 0)),
            pl.BlockSpec((CT, Kp),    lambda ct, b: (ct, 0)),
            pl.BlockSpec((CT, 1),     lambda ct, b: (ct, 0)),
        ],
        out_specs=pl.BlockSpec((nb, CT, M), lambda ct, b: (b, ct, 0)),
        compiler_params=pltpu.CompilerParams(
            dimension_semantics=("parallel", "parallel"),
            vmem_limit_bytes=vmem_limit),
    )(patches, w_mat, scale_col)

    # Only leading-dim slices + a free reshape: output is already N-C-(HW).
    out = out[:N, :Cout].reshape(N, Cout, Ho, Wo)
    return out.astype(x_nchw.dtype)


def _reference(x_nchw, weight_flat, shape, stride=1, padding=1):
    """Pure-JAX f32 reference of the torch forward, for validation."""
    w = weight_flat.reshape(shape).astype(jnp.float32)            # OIHW
    scale = jnp.mean(jnp.abs(w), axis=(1, 2, 3), keepdims=True)
    bw = scale * jnp.sign(w)
    return jax.lax.conv_general_dilated(
        x_nchw.astype(jnp.float32), bw, window_strides=(stride, stride),
        padding=[(padding, padding), (padding, padding)],
        dimension_numbers=("NCHW", "OIHW", "NCHW"))


if __name__ == "__main__":
    # Small shapes consistent with the module: batch=2, in_channel=4,
    # out_channel=8, spatial 16x16, kernel=3, stride=1, padding=1.
    N, Cin, Cout, H, W, K = 2, 4, 8, 16, 16, 3
    key = jax.random.PRNGKey(0)
    kx, kw = jax.random.split(key)

    x = jax.random.normal(kx, (N, Cin, H, W), dtype=jnp.float32)
    # Deterministic stand-in for torch.rand((num_weight, 1)) * 0.001
    weight = jax.random.uniform(kw, (Cout * Cin * K * K, 1), dtype=jnp.float32) * 0.001

    y = binary_conv(x, weight, (Cout, Cin, K, K), stride=1, padding=1)
    y = jax.block_until_ready(y)

    y_ref = _reference(x, weight, (Cout, Cin, K, K), stride=1, padding=1)
    assert y.shape == (N, Cout, H, W)
    # bf16 activations on the MXU vs f32 reference (weights are exact +/-1,
    # scale applied in f32) -> compare with a relative-to-max bound.
    rel_err = jnp.max(jnp.abs(y - y_ref)) / (jnp.max(jnp.abs(y_ref)) + 1e-12)
    assert float(rel_err) < 3e-2, f"max relative error {float(rel_err)}"

    print("KERNEL_OK")
</pallas_src>

<mosaic_0001>
module attributes {stable_mosaic.version = 11 : i64} {
  func.func @_binary_conv_kernel(%arg0: i32, %arg1: i32, %arg2: memref<2x40x256xbf16, #tpu.memory_space<vmem>>, %arg3: memref<8x40xbf16, #tpu.memory_space<vmem>>, %arg4: memref<8x1xf32, #tpu.memory_space<vmem>>, %arg5: memref<2x8x256xf32, #tpu.memory_space<vmem>>) attributes {dimension_semantics = [#tpu.dimension_semantics<parallel>, #tpu.dimension_semantics<parallel>], iteration_bounds = array<i64: 1, 1>, scalar_prefetch = 0 : i64, scratch_operands = 0 : i64, tpu.core_type = #tpu.core_type<tc>, window_params = [{transform_indices = @transform_0, window_bounds = array<i64: 2, 40, 256>}, {transform_indices = @transform_1, window_bounds = array<i64: 8, 40>}, {transform_indices = @transform_2, window_bounds = array<i64: 8, 1>}, {transform_indices = @transform_3, window_bounds = array<i64: 2, 8, 256>}]} {
    %c0 = arith.constant 0 : index
    %c0_0 = arith.constant 0 : index
    %0 = vector.load %arg3[%c0, %c0_0] : memref<8x40xbf16, #tpu.memory_space<vmem>>, vector<8x40xbf16>
    %c0_1 = arith.constant 0 : index
    %c0_2 = arith.constant 0 : index
    %1 = vector.load %arg4[%c0_1, %c0_2] : memref<8x1xf32, #tpu.memory_space<vmem>>, vector<8x1xf32>
    %c0_3 = arith.constant 0 : index
    %c0_4 = arith.constant 0 : index
    %c0_5 = arith.constant 0 : index
    %2 = vector.load %arg2[%c0_3, %c0_4, %c0_5] : memref<2x40x256xbf16, #tpu.memory_space<vmem>>, vector<1x40x256xbf16>
    %3 = vector.shape_cast %2 : vector<1x40x256xbf16> to vector<40x256xbf16>
    %cst = arith.constant dense<0.000000e+00> : vector<8x256xf32>
    %4 = tpu.matmul %0, %3, %cst {dimension_numbers = #tpu.dot_dimension_numbers<[1], [0], [0], [1], [0, 0, 1, 1], [], []>} : vector<8x40xbf16>, vector<40x256xbf16>, vector<8x256xf32> -> vector<8x256xf32>
    %5 = vector.broadcast %1 : vector<8x1xf32> to vector<8x256xf32>
    %6 = arith.mulf %4, %5 : vector<8x256xf32>
    %c0_6 = arith.constant 0 : index
    %c0_7 = arith.constant 0 : index
    %c0_8 = arith.constant 0 : index
    %7 = vector.load %arg5[%c0_6, %c0_7, %c0_8] : memref<2x8x256xf32, #tpu.memory_space<vmem>>, vector<1x8x256xf32>
    %8 = vector.shape_cast %7 : vector<1x8x256xf32> to vector<8x256xf32>
    %9 = vector.shape_cast %6 : vector<8x256xf32> to vector<1x8x256xf32>
    tpu.vector_store %arg5[%c0_6, %c0_7, %c0_8], %9 {strides = array<i32>} : memref<2x8x256xf32, #tpu.memory_space<vmem>>, vector<1x8x256xf32>,
    %c1 = arith.constant 1 : index
    %c0_9 = arith.constant 0 : index
    %c0_10 = arith.constant 0 : index
    %10 = vector.load %arg2[%c1, %c0_9, %c0_10] : memref<2x40x256xbf16, #tpu.memory_space<vmem>>, vector<1x40x256xbf16>
    %11 = vector.shape_cast %10 : vector<1x40x256xbf16> to vector<40x256xbf16>
    %cst_11 = arith.constant dense<0.000000e+00> : vector<8x256xf32>
    %12 = tpu.matmul %0, %11, %cst_11 {dimension_numbers = #tpu.dot_dimension_numbers<[1], [0], [0], [1], [0, 0, 1, 1], [], []>} : vector<8x40xbf16>, vector<40x256xbf16>, vector<8x256xf32> -> vector<8x256xf32>
    %13 = vector.broadcast %1 : vector<8x1xf32> to vector<8x256xf32>
    %14 = arith.mulf %12, %13 : vector<8x256xf32>
    %c1_12 = arith.constant 1 : index
    %c0_13 = arith.constant 0 : index
    %c0_14 = arith.constant 0 : index
    %15 = vector.load %arg5[%c1_12, %c0_13, %c0_14] : memref<2x8x256xf32, #tpu.memory_space<vmem>>, vector<1x8x256xf32>
    %16 = vector.shape_cast %15 : vector<1x8x256xf32> to vector<8x256xf32>
    %17 = vector.shape_cast %14 : vector<8x256xf32> to vector<1x8x256xf32>
    tpu.vector_store %arg5[%c1_12, %c0_13, %c0_14], %17 {strides = array<i32>} : memref<2x8x256xf32, #tpu.memory_space<vmem>>, vector<1x8x256xf32>,
    return
  }
  func.func @transform_0(%arg0: i32, %arg1: i32) -> (i32, i32, i32) {
    %c0_i32 = arith.constant 0 : i32
    %c0_i32_0 = arith.constant 0 : i32
    %c0_i32_1 = arith.constant 0 : i32
    return %arg1, %c0_i32, %c0_i32_0 : i32, i32, i32
  }
  func.func @transform_1(%arg0: i32, %arg1: i32) -> (i32, i32) {
    %c0_i32 = arith.constant 0 : i32
    %c0_i32_0 = arith.constant 0 : i32
    return %arg0, %c0_i32 : i32, i32
  }
  func.func @transform_2(%arg0: i32, %arg1: i32) -> (i32, i32) {
    %c0_i32 = arith.constant 0 : i32
    %c0_i32_0 = arith.constant 0 : i32
    return %arg0, %c0_i32 : i32, i32
  }
  func.func @transform_3(%arg0: i32, %arg1: i32) -> (i32, i32, i32) {
    %c0_i32 = arith.constant 0 : i32
    %c0_i32_0 = arith.constant 0 : i32
    return %arg1, %arg0, %c0_i32 : i32, i32, i32
  }
}

</mosaic_0001>

<bundles_post_ra>
// kernel: tpu_custom_call.1
= control target key start
LH: loop header
LB: loop body
LE: loop exit
PB: predicated region body
PF: predicated region fallthrough
CT: control target
= control target key end

     0   :  { %8 = vsyncpa [#allocation3], 0  ;;  %s344_s0 = inlined_call_operand.hbm [shape: bf16[2,40,256], index: 0, kind: input, shape index: {}]   ;;  %s345_s1 = inlined_call_operand.vmem [shape: bf16[8,40], index: 1, kind: input, shape index: {}]   ;;  %s346_s2 = inlined_call_operand.vmem [shape: f32[8,1], index: 2, kind: input, shape index: {}]   ;;  %s347_s3 = inlined_call_operand.hbm [shape: f32[2,8,256], index: 3, kind: output, shape index: {}]  }
   0x1   :  { %9 = vsyncpa [#allocation4], 0  ;;  %s14_s14 = sshll.u32 %s344_s0, 4  ;;  %s301_s15 = smov [#allocation2]   ;;  %s15_s14 = int_to_ptr.hbm [resolvable:$true] %s14_s14 }
   0x2   :  { %s16_s16 = sshll.u32 %s301_s15, 4  ;;  %s302_s17 = smov 128   ;;  %s17_s16 = int_to_ptr.vmem [resolvable:$true] %s16_s16 }
   0x3   :  { %s303_s18 = smov 8  }
   0x4   :  { %22 = dma.hbm_to_vmem [thread:$0]  %s15_s14, 1280, %s17_s16, [#allocation3], %s302_s17, %s302_s17, %s303_s18  }
   0x5   :  { %297 = dma.done.wait [#allocation3], 1280  }
   0x6   :  { %298 = vsyncadd [#allocation3], 4294966016  ;;  %v304_v0 = vmov 0   ;;  %v38_v1 = vld [vmem:[#allocation2 + $0x20] sm:$0xff]  ;;  %v115_v2 = vld [vmem:[#allocation2 + $0x48] sm:$0xff]  ;;  %vm68_vm0 = vcmask 1043456  }
   0x7   :  { %248 = vset.pattern.permute.xlu0 %v304_v0  ;;  %v52_v3 = vunpack.c.l.b16 %v38_v1  ;;  %v53_v4 = vunpack.c.h.b16 %v38_v1  ;;  %v129_v5 = vunpack.c.l.b16 %v115_v2  ;;  %v130_v6 = vunpack.c.h.b16 %v115_v2  ;;  %v207_v7 = vld [vmem:[#allocation2 + $0x10] sm:$0xf]  ;;  %v236_v8 = vld [vmem:[#allocation2 + $0x14] sm:$0xf0]  ;;  %v235_v13 = vld [vmem:[#allocation2 + $0x14] sm:$0xf] }
   0x8   :  { %v209_v14 = vld [vmem:[#allocation2 + $0x18] sm:$0xf0]  ;;  %v225_v15 = vld [vmem:[#allocation2 + $0x38] sm:$0xf]  ;;  %v240_v16 = vld [vmem:[#allocation2 + $0x3c] sm:$0xf0]  ;;  %v208_v23 = vor.u32 %v236_v8, %v207_v7 }
   0x9   :  { %v58_v9 = vpack.c.b16 %v52_v3, %v52_v3  ;;  %v59_v10 = vpack.c.b16 %v53_v4, %v53_v4  ;;  %v135_v11 = vpack.c.b16 %v129_v5, %v129_v5  ;;  %v136_v12 = vpack.c.b16 %v130_v6, %v130_v6  ;;  %v239_v17 = vld [vmem:[#allocation2 + $0x3c] sm:$0xf]  ;;  %v227_v18 = vld [vmem:[#allocation2 + $0x40] sm:$0xf0]  ;;  %v199_v25 = vld [vmem:[#allocation2] sm:$0xf] }
   0xa   :  { %v212_v24 = vor.u32 %v235_v13, %v209_v14  ;;  %v234_v26 = vld [vmem:[#allocation2 + $0x4] sm:$0xf0]  ;;  %v233_v27 = vld [vmem:[#allocation2 + $0x4] sm:$0xf]  ;;  %v226_v28 = vor.u32 %v240_v16, %v225_v15  ;;  %v230_v29 = vor.u32 %v239_v17, %v227_v18  ;;  %v201_v30 = vld [vmem:[#allocation2 + $0x8] sm:$0xf0] }
   0xb   :  { %v70_v19 = vsel %vm68_vm0, %v58_v9, 0  ;;  %v73_v20 = vsel %vm68_vm0, %v59_v10, 0  ;;  %v142_v21 = vsel %vm68_vm0, %v135_v11, 0  ;;  %v145_v22 = vsel %vm68_vm0, %v136_v12, 0  ;;  %v217_v31 = vld [vmem:[#allocation2 + $0x28] sm:$0xf] }
   0xc   :  { %80 = vmatpush.bf16.msra.mxu0 %v70_v19  ;;  %93 = vmatpush.bf16.msra.mxu1 %v73_v20  ;;  %v33_v32 = vld [vmem:[%s346_s2] sm:$0xff]  ;;  %v238_v33 = vld [vmem:[#allocation2 + $0x2c] sm:$0xf0]  ;;  %v237_v34 = vld [vmem:[#allocation2 + $0x2c] sm:$0xf]  ;;  %v200_v36 = vor.u32 %v234_v26, %v199_v25  ;;  %v204_v37 = vor.u32 %v233_v27, %v201_v30  ;;  %vm64_vm1 = vcmask 326656  }
   0xd   :  { %152 = vmatpush.bf16.msra.mxu2 %v142_v21  ;;  %165 = vmatpush.bf16.msra.mxu3 %v145_v22  ;;  %v219_v35 = vld [vmem:[#allocation2 + $0x30] sm:$0xf0]  ;;  %v218_v38 = vor.u32 %v238_v33, %v217_v31  ;;  %v32_v40 = vld [vmem:[%s345_s1] sm:$0xf]  ;;  %s305_s2 = smov [#allocation5]   ;;  %s184_s1 = sshll.u32 %s347_s3, 4  ;;  %s185_s1 = int_to_ptr.hbm [resolvable:$true] %s184_s1 }
   0xe   :  { %103 = vperm.xlu0 %248, %v33_v32   ;;  %v222_v39 = vor.u32 %v237_v34, %v219_v35  ;;  %s182_s22 = sshll.u32 %s305_s2, 4  ;;  %s306_s25 = smov 256   ;;  %s183_s22 = int_to_ptr.vmem [resolvable:$true] %s182_s22 }
   0xf   :  { %s307_s26 = smov 16  }
  0x10   :  { %81 = vmatpush.bf16.msra.mxu0 %v208_v23  ;;  %94 = vmatpush.bf16.msra.mxu1 %v212_v24 }
  0x11   :  { %153 = vmatpush.bf16.msra.mxu2 %v226_v28  ;;  %166 = vmatpush.bf16.msra.mxu3 %v230_v29 }
  0x14   :  { %82 = vmatpush.bf16.msra.mxu0 %v200_v36  ;;  %95 = vmatpush.bf16.msra.mxu1 %v204_v37 }
  0x15   :  { %154 = vmatpush.bf16.msra.mxu2 %v218_v38  ;;  %167 = vmatpush.bf16.msra.mxu3 %v222_v39 }
  0x17   :  { %213 = vmatmul.msk.bf16.vlgmr.msra.gmra.mxu0 %vm64_vm1, %v32_v40  ;;  %214 = vmatmul.msk.bf16.vlgmr.msra.gmra.mxu1 %vm64_vm1, %v32_v40 }
  0x18   :  { %231 = vmatmul.msk.bf16.vlgmr.msra.gmra.mxu2 %vm64_vm1, %v32_v40  ;;  %232 = vmatmul.msk.bf16.vlgmr.msra.gmra.mxu3 %vm64_vm1, %v32_v40 }
  0x80   :  { %v104_v41 = vpop.permute.xlu0 %103 }
  0x94   :  { %v84_v42 = vpop.f32.mrf.mxu0  ;;  %v97_v43 = vpop.f32.mrf.mxu1 }
  0x95   :  { %v106_v44 = vmul.f32 %v104_v41, %v84_v42  ;;  %v107_v45 = vmul.f32 %v104_v41, %v97_v43 }
  0x97   :  { %108 = vst [vmem:[#allocation5] sm:$0xff] %v106_v44 }
  0x98   :  { %109 = vst [vmem:[#allocation5 + $0x8] sm:$0xff] %v107_v45 }
  0x9b   :  { %v156_v46 = vpop.f32.mrf.mxu2  ;;  %v169_v47 = vpop.f32.mrf.mxu3 }
  0x9c   :  { %v173_v48 = vmul.f32 %v156_v46, %v104_v41  ;;  %v174_v49 = vmul.f32 %v169_v47, %v104_v41  ;;  %v86_v50 = vpop.f32.mrf.mxu0  ;;  %v99_v51 = vpop.f32.mrf.mxu1 }
  0x9e   :  { %176 = vst [vmem:[#allocation5 + $0x10] sm:$0xff] %v173_v48 }
  0x9f   :  { %177 = vst [vmem:[#allocation5 + $0x18] sm:$0xff] %v174_v49 }
  0xa0   :  { %190 = dma.vmem_to_hbm [thread:$0]  %s183_s22, 512, %s185_s1, [#allocation4], %s306_s25, %s306_s25, %s307_s26  }
  0xa3   :  { %v158_v52 = vpop.f32.mrf.mxu2  ;;  %v171_v53 = vpop.f32.mrf.mxu3 }
  0xa4   :  { %299 = dma.done.wait [#allocation4], 512  }
  0xa5   :  { %300 = vsyncadd [#allocation4], 4294966784 }
  0xa6   :  { %195 = vsyncpa [#allocation3], 1 }
  0xa7   :  { %196 = vsyncpa [#allocation4], 1 }

</bundles_post_ra>
